<compile_context>
chip_gen: v6e
topology: v6e:2x2x1
jax: 0.10.0
libtpu: 0.0.40
codegen_flags: <defaults>
</compile_context>

<pallas_src>
import numpy as np
import jax
import jax.numpy as jnp
from jax.experimental import pallas as pl
from jax.experimental.pallas import tpu as pltpu

ANCHOR_NUM = 9


def _round_up(x, m):
    return -(-x // m) * m


def _pick_tm(hw):
    # Aim for >= 4 grid steps (feeds v7x's 2 TCs + keeps the pipeline busy)
    # while allowing tiles up to 512 rows; multiple of 8 (sublane constraint).
    tm = min(512, max(8, (hw // 4) // 8 * 8))
    return tm


# ---------------------------------------------------------------------------
# Pallas kernel: fused 3x3 conv (deep-K matmul) + ReLU + fused 1x1 heads
# ---------------------------------------------------------------------------
def make_rpn_kernel(A):
    def kernel(x_ref, w1_ref, b1_ref, wh_ref, bh_ref, out_ref):
        # x_ref:  (TM, Kp)   bf16  im2col rows for this row block (Kp=rnd(9C,128))
        # w1_ref: (Kp, Cp)   bf16  3x3 conv weight, tap-major, [in, out]
        # b1_ref: (1, Cp)    f32
        # wh_ref: (Cp, 128)  bf16  fused heads: [classifier(A) | bbox(4A) | 0]
        # bh_ref: (1, 128)   f32
        # out_ref:(TM, 128)  f32   [sigmoid(scores) | bbox deltas | pad lanes]
        acc = jnp.dot(x_ref[...], w1_ref[...],
                      preferred_element_type=jnp.float32)          # (TM, Cp)
        feat = jnp.maximum(acc + b1_ref[...], 0.0)                  # ReLU (f32)
        z = jnp.dot(feat.astype(jnp.bfloat16), wh_ref[...],
                    preferred_element_type=jnp.float32) + bh_ref[...]
        col = jax.lax.broadcasted_iota(jnp.int32, z.shape, 1)
        out_ref[...] = jnp.where(col < A, jax.nn.sigmoid(z), z)
    return kernel


def rpn_conv_heads(x_nchw, params):
    """Run the fused RPN conv kernel. x_nchw: (1, C, H, W) float32."""
    assert x_nchw.shape[0] == 1
    _, C, H, W = x_nchw.shape
    A = ANCHOR_NUM
    Cp = max(128, _round_up(C, 128))
    K = 9 * C
    Kp = _round_up(K, 128)          # K padded ONCE (not per tap)
    HW = H * W
    TM = _pick_tm(HW)
    P = _round_up(HW, TM)

    w1, b1, wh, bh = params
    assert w1.shape == (Kp, Cp) and wh.shape == (Cp, 128)

    # One preprocessing pass: NCHW -> HWC, bf16, 3x3 halo pad, tight im2col.
    x_hwc = jnp.transpose(x_nchw[0], (1, 2, 0)).astype(jnp.bfloat16)  # (H, W, C)
    xpad = jnp.pad(x_hwc, ((1, 1), (1, 1), (0, 0)))
    cols = [xpad[dy:dy + H, dx:dx + W, :] for dy in range(3) for dx in range(3)]
    x_im2col = jnp.concatenate(cols, axis=-1).reshape(HW, K)          # (HW, 9C)
    x_im2col = jnp.pad(x_im2col, ((0, P - HW), (0, Kp - K)))          # (P, Kp)

    # VMEM budget: double-buffered input/output tiles + resident weights.
    vmem_need = 2 * (TM * Kp * 2 + Kp * Cp * 2 + Cp * 4
                     + Cp * 128 * 2 + 128 * 4 + TM * 128 * 4)
    vmem_limit = int(min(64 * 1024 * 1024, max(32 * 1024 * 1024, 2 * vmem_need)))

    kernel = make_rpn_kernel(A)
    grid_spec = pltpu.PrefetchScalarGridSpec(
        num_scalar_prefetch=0,
        grid=(P // TM,),
        in_specs=[
            pl.BlockSpec((TM, Kp), lambda i: (i, 0)),     # row-tiled im2col
            pl.BlockSpec((Kp, Cp), lambda i: (0, 0)),     # weights VMEM-resident
            pl.BlockSpec((1, Cp), lambda i: (0, 0)),
            pl.BlockSpec((Cp, 128), lambda i: (0, 0)),
            pl.BlockSpec((1, 128), lambda i: (0, 0)),
        ],
        out_specs=pl.BlockSpec((TM, 128), lambda i: (i, 0)),
    )

    out = pl.pallas_call(
        kernel,
        grid_spec=grid_spec,
        out_shape=jax.ShapeDtypeStruct((P, 128), jnp.float32),
        compiler_params=pltpu.CompilerParams(
            dimension_semantics=("parallel",),
            vmem_limit_bytes=vmem_limit),
    )(x_im2col, w1, b1, wh, bh)

    out = out[:HW]                                                    # drop row pad
    scores = out[:, :A].reshape(1, H, W, A)
    bbox = out[:, A:5 * A].reshape(1, H, W, 4 * A)
    return scores, bbox


# ---------------------------------------------------------------------------
# Plain-JAX glue: proposal generation (delta apply, clip, filter, NMS)
# ---------------------------------------------------------------------------
def compute_bbox(anchors, deltas):
    # anchors: (N, 4) [cy, cx, h, w];  deltas: (N, 4) [dy, dx, dh, dw]
    # (box_delta_means=0, box_delta_stds=1 in the reference call)
    cy, cx, h, w = anchors[:, 0], anchors[:, 1], anchors[:, 2], anchors[:, 3]
    dy, dx, dh, dw = deltas[:, 0], deltas[:, 1], deltas[:, 2], deltas[:, 3]
    pcy = cy + dy * h
    pcx = cx + dx * w
    ph = h * jnp.exp(dh)
    pw = w * jnp.exp(dw)
    y1 = pcy - 0.5 * ph
    x1 = pcx - 0.5 * pw
    y2 = pcy + 0.5 * ph
    x2 = pcx + 0.5 * pw
    return jnp.stack([y1, x1, y2, x2], axis=1)        # corners [y1, x1, y2, x2]


def propose_boxes(scores_flat, deltas_flat, anchors_flat, image_shape,
                  before_n, after_n):
    # Top-N by objectness score (replaces full argsort + flip).
    _, order = jax.lax.top_k(scores_flat, before_n)
    props = compute_bbox(anchors_flat[order], deltas_flat[order])

    # clip_bbox (matches the torch reference exactly)
    props = props.at[:, 0:2].set(jnp.maximum(props[:, 0:2], 0.0))
    props = props.at[:, 2].set(jnp.minimum(props[:, 2], float(image_shape[1])))
    props = props.at[:, 3].set(jnp.minimum(props[:, 3], float(image_shape[2])))

    # size filter (>= 16 in both dims)
    hgt = props[:, 2] - props[:, 0]
    wid = props[:, 3] - props[:, 1]
    valid = (hgt >= 16.0) & (wid >= 16.0)

    # Vectorized greedy NMS @ IoU 0.7: precompute the before_n x before_n IoU
    # matrix, then a sequential suppression scan (boxes are score-descending).
    n = before_n
    y1, x1, y2, x2 = props[:, 0], props[:, 1], props[:, 2], props[:, 3]
    areas = (y2 - y1) * (x2 - x1)
    yy1 = jnp.maximum(y1[:, None], y1[None, :])
    xx1 = jnp.maximum(x1[:, None], x1[None, :])
    yy2 = jnp.minimum(y2[:, None], y2[None, :])
    xx2 = jnp.minimum(x2[:, None], x2[None, :])
    inter = jnp.maximum(yy2 - yy1, 0.0) * jnp.maximum(xx2 - xx1, 0.0)
    iou = inter / jnp.maximum(areas[:, None] + areas[None, :] - inter, 1e-9)
    later = jnp.arange(n)[None, :] > jnp.arange(n)[:, None]
    suppress_if_kept = (iou > 0.7) & later                # (n, n) bool

    def body(i, keep):
        return keep & ~(keep[i] & suppress_if_kept[i])

    keep = jax.lax.fori_loop(0, n, body, valid)

    # TODO(synk): the torch reference produces a dynamically-sized proposal set;
    # here kept boxes are packed first (score order preserved, stable argsort)
    # and the fixed-size output is zero-padded if fewer than `after_n` survive.
    sel = jnp.argsort(jnp.where(keep, 0, 1))[:after_n]
    return props[sel] * keep[sel][:, None].astype(props.dtype)


def rpn_forward(x, image_shape, anchors, anchors_valid_map,
                before_proposal_num, after_proposal_num, params,
                exclude_edge_proposals=False):
    scores, bbox_reg = rpn_conv_heads(x, params)          # Pallas hot path
    H, W = scores.shape[1], scores.shape[2]
    A = ANCHOR_NUM

    # _extract_valid_anchors (exclude_edge_proposals=False path)
    # TODO(synk): exclude_edge_proposals=True needs boolean-mask compaction
    # (dynamic output shape) — not expressible in traced JAX; False path only.
    del exclude_edge_proposals, anchors_valid_map
    anchors_flat = jnp.asarray(anchors, jnp.float32).reshape(H * W * A, 4)
    scores_flat = scores.reshape(H * W * A)
    deltas_flat = bbox_reg.reshape(H * W * A, 4)

    proposals = propose_boxes(scores_flat, deltas_flat, anchors_flat,
                              image_shape, before_proposal_num,
                              after_proposal_num)
    return scores, bbox_reg, proposals


# ---------------------------------------------------------------------------
# Deterministic parameter / input construction
# ---------------------------------------------------------------------------
def init_params(key, C):
    """Build kernel-ready (packed / padded / bf16) RPN parameters."""
    A = ANCHOR_NUM
    Cp = max(128, _round_up(C, 128))
    K = 9 * C
    Kp = _round_up(K, 128)
    k1, k2, k3 = jax.random.split(key, 3)

    # torch-style weights
    w1_t = 0.01 * jax.random.normal(k1, (C, C, 3, 3), jnp.float32)   # (out,in,kh,kw)
    wc_t = 0.01 * jax.random.normal(k2, (A, C), jnp.float32)         # 1x1 (out,in)
    wb_t = 0.01 * jax.random.normal(k3, (4 * A, C), jnp.float32)     # 1x1 (out,in)
    b1_t = jnp.zeros((C,), jnp.float32)
    bc_t = jnp.zeros((A,), jnp.float32)
    bb_t = jnp.zeros((4 * A,), jnp.float32)

    # 3x3 conv -> single deep-K weight (Kp, Cp), tap-major K = [tap0 in-ch,
    # tap1 in-ch, ...] (tight 9*C packing, padded once), [in, out], bf16.
    taps = jnp.transpose(w1_t, (2, 3, 1, 0)).reshape(K, C)           # (9C, C)
    w1 = jnp.zeros((Kp, Cp), jnp.float32).at[:K, :C].set(taps)
    w1 = w1.astype(jnp.bfloat16)
    b1 = jnp.zeros((1, Cp), jnp.float32).at[0, :C].set(b1_t)

    # Fused 1x1 heads: (Cp, 128) = [classifier(A) | bbox(4A) | zero pad], bf16.
    wh = jnp.zeros((Cp, 128), jnp.float32)
    wh = wh.at[:C, :A].set(wc_t.T).at[:C, A:5 * A].set(wb_t.T)
    wh = wh.astype(jnp.bfloat16)
    bh = jnp.zeros((1, 128), jnp.float32).at[0, :A].set(bc_t)
    bh = bh.at[0, A:5 * A].set(bb_t)
    return (w1, b1, wh, bh)


def make_anchors(H, W, stride):
    scales = [32.0, 64.0, 128.0]
    ratios = [0.5, 1.0, 2.0]
    anchors = np.zeros((H, W, ANCHOR_NUM * 4), np.float32)
    valid = np.ones((H, W, ANCHOR_NUM), np.float32)
    for y in range(H):
        for x in range(W):
            cy = (y + 0.5) * stride
            cx = (x + 0.5) * stride
            a = 0
            for s in scales:
                for r in ratios:
                    h = s * np.sqrt(r)
                    w = s / np.sqrt(r)
                    anchors[y, x, 4 * a:4 * a + 4] = [cy, cx, h, w]
                    a += 1
    return anchors, valid


if __name__ == "__main__":
    key = jax.random.PRNGKey(0)
    C, H, W = 32, 16, 16                     # feature map (batch must be 1)
    stride = 16
    image_shape = (3, H * stride, W * stride)
    before_n, after_n = 64, 16

    k_x, k_p = jax.random.split(key)
    x = jax.random.normal(k_x, (1, C, H, W), jnp.float32)   # NCHW like torch
    params = init_params(k_p, C)
    anchors, anchors_valid = make_anchors(H, W, stride)

    scores, bbox_reg, proposals = rpn_forward(
        x, image_shape, anchors, anchors_valid, before_n, after_n, params)
    jax.block_until_ready((scores, bbox_reg, proposals))

    assert scores.shape == (1, H, W, ANCHOR_NUM)
    assert bbox_reg.shape == (1, H, W, 4 * ANCHOR_NUM)
    assert proposals.shape == (after_n, 4)
    assert bool(jnp.all(jnp.isfinite(scores)))
    assert bool(jnp.all(jnp.isfinite(bbox_reg)))
    assert bool(jnp.all((scores >= 0.0) & (scores <= 1.0)))
    print("KERNEL_OK")
</pallas_src>

<mosaic_0001>
module attributes {stable_mosaic.version = 11 : i64} {
  func.func @kernel(%arg0: i32, %arg1: memref<64x384xbf16, #tpu.memory_space<vmem>>, %arg2: memref<384x128xbf16, #tpu.memory_space<vmem>>, %arg3: memref<1x128xf32, #tpu.memory_space<vmem>>, %arg4: memref<128x128xbf16, #tpu.memory_space<vmem>>, %arg5: memref<1x128xf32, #tpu.memory_space<vmem>>, %arg6: memref<64x128xf32, #tpu.memory_space<vmem>>) attributes {dimension_semantics = [#tpu.dimension_semantics<parallel>], iteration_bounds = array<i64: 4>, scalar_prefetch = 0 : i64, scratch_operands = 0 : i64, tpu.core_type = #tpu.core_type<tc>, window_params = [{transform_indices = @transform_0, window_bounds = array<i64: 64, 384>}, {pipeline_mode = #tpu.pipeline_mode<synchronous>, transform_indices = @transform_1, window_bounds = array<i64: 384, 128>}, {pipeline_mode = #tpu.pipeline_mode<synchronous>, transform_indices = @transform_2, window_bounds = array<i64: 1, 128>}, {pipeline_mode = #tpu.pipeline_mode<synchronous>, transform_indices = @transform_3, window_bounds = array<i64: 128, 128>}, {pipeline_mode = #tpu.pipeline_mode<synchronous>, transform_indices = @transform_4, window_bounds = array<i64: 1, 128>}, {transform_indices = @transform_5, window_bounds = array<i64: 64, 128>}]} {
    %c0 = arith.constant 0 : index
    %c0_0 = arith.constant 0 : index
    %0 = vector.load %arg1[%c0, %c0_0] : memref<64x384xbf16, #tpu.memory_space<vmem>>, vector<64x384xbf16>
    %c0_1 = arith.constant 0 : index
    %c0_2 = arith.constant 0 : index
    %1 = vector.load %arg2[%c0_1, %c0_2] : memref<384x128xbf16, #tpu.memory_space<vmem>>, vector<384x128xbf16>
    %cst = arith.constant dense<0.000000e+00> : vector<64x128xf32>
    %2 = tpu.matmul %0, %1, %cst {dimension_numbers = #tpu.dot_dimension_numbers<[1], [0], [0], [1], [0, 0, 1, 1], [], []>} : vector<64x384xbf16>, vector<384x128xbf16>, vector<64x128xf32> -> vector<64x128xf32>
    %c0_3 = arith.constant 0 : index
    %c0_4 = arith.constant 0 : index
    %3 = vector.load %arg3[%c0_3, %c0_4] : memref<1x128xf32, #tpu.memory_space<vmem>>, vector<1x128xf32>
    %4 = vector.broadcast %3 : vector<1x128xf32> to vector<64x128xf32>
    %5 = arith.addf %2, %4 : vector<64x128xf32>
    %cst_5 = arith.constant 0.000000e+00 : f32
    %6 = vector.broadcast %cst_5 : f32 to vector<64x128xf32>
    %7 = arith.maximumf %5, %6 : vector<64x128xf32>
    %8 = arith.truncf %7 : vector<64x128xf32> to vector<64x128xbf16>
    %c0_6 = arith.constant 0 : index
    %c0_7 = arith.constant 0 : index
    %9 = vector.load %arg4[%c0_6, %c0_7] : memref<128x128xbf16, #tpu.memory_space<vmem>>, vector<128x128xbf16>
    %cst_8 = arith.constant dense<0.000000e+00> : vector<64x128xf32>
    %10 = tpu.matmul %8, %9, %cst_8 {dimension_numbers = #tpu.dot_dimension_numbers<[1], [0], [0], [1], [0, 0, 1, 1], [], []>} : vector<64x128xbf16>, vector<128x128xbf16>, vector<64x128xf32> -> vector<64x128xf32>
    %c0_9 = arith.constant 0 : index
    %c0_10 = arith.constant 0 : index
    %11 = vector.load %arg5[%c0_9, %c0_10] : memref<1x128xf32, #tpu.memory_space<vmem>>, vector<1x128xf32>
    %12 = vector.broadcast %11 : vector<1x128xf32> to vector<64x128xf32>
    %13 = arith.addf %10, %12 : vector<64x128xf32>
    %14 = tpu.iota {dimensions = array<i32: 1>} : vector<64x128xi32>
    %c9_i32 = arith.constant 9 : i32
    %15 = vector.broadcast %c9_i32 : i32 to vector<64x128xi32>
    %16 = arith.cmpi slt, %14, %15 : vector<64x128xi32>
    %17 = arith.negf %13 : vector<64x128xf32>
    %18 = math.exp %17 : vector<64x128xf32>
    %cst_11 = arith.constant 1.000000e+00 : f32
    %19 = vector.broadcast %cst_11 : f32 to vector<64x128xf32>
    %20 = arith.addf %19, %18 : vector<64x128xf32>
    %21 = arith.divf %19, %20 : vector<64x128xf32>
    %22 = arith.select %16, %21, %13 : vector<64x128xi1>, vector<64x128xf32>
    %c0_12 = arith.constant 0 : index
    %c0_13 = arith.constant 0 : index
    %23 = vector.load %arg6[%c0_12, %c0_13] : memref<64x128xf32, #tpu.memory_space<vmem>>, vector<64x128xf32>
    tpu.vector_store %arg6[%c0_12, %c0_13], %22 {strides = array<i32>} : memref<64x128xf32, #tpu.memory_space<vmem>>, vector<64x128xf32>,
    return
  }
  func.func @transform_0(%arg0: i32) -> (i32, i32) {
    %c0_i32 = arith.constant 0 : i32
    %c0_i32_0 = arith.constant 0 : i32
    return %arg0, %c0_i32 : i32, i32
  }
  func.func @transform_1(%arg0: i32) -> (i32, i32) {
    %c0_i32 = arith.constant 0 : i32
    %c0_i32_0 = arith.constant 0 : i32
    %c0_i32_1 = arith.constant 0 : i32
    return %c0_i32, %c0_i32_0 : i32, i32
  }
  func.func @transform_2(%arg0: i32) -> (i32, i32) {
    %c0_i32 = arith.constant 0 : i32
    %c0_i32_0 = arith.constant 0 : i32
    %c0_i32_1 = arith.constant 0 : i32
    return %c0_i32, %c0_i32_0 : i32, i32
  }
  func.func @transform_3(%arg0: i32) -> (i32, i32) {
    %c0_i32 = arith.constant 0 : i32
    %c0_i32_0 = arith.constant 0 : i32
    %c0_i32_1 = arith.constant 0 : i32
    return %c0_i32, %c0_i32_0 : i32, i32
  }
  func.func @transform_4(%arg0: i32) -> (i32, i32) {
    %c0_i32 = arith.constant 0 : i32
    %c0_i32_0 = arith.constant 0 : i32
    %c0_i32_1 = arith.constant 0 : i32
    return %c0_i32, %c0_i32_0 : i32, i32
  }
  func.func @transform_5(%arg0: i32) -> (i32, i32) {
    %c0_i32 = arith.constant 0 : i32
    %c0_i32_0 = arith.constant 0 : i32
    return %arg0, %c0_i32 : i32, i32
  }
}

</mosaic_0001>

<bundles_post_ra>
// kernel: tpu_custom_call.1
= control target key start
LH: loop header
LB: loop body
LE: loop exit
PB: predicated region body
PF: predicated region fallthrough
CT: control target
= control target key end

     0   :  { %10 = vsyncpa [#allocation3], 0  ;;  %s1778_s0 = inlined_call_operand.hbm [shape: bf16[256,384], index: 0, kind: input, shape index: {}]   ;;  %s1779_s1 = inlined_call_operand.hbm [shape: bf16[384,128], index: 1, kind: input, shape index: {}]   ;;  %s1780_s2 = inlined_call_operand.vmem [shape: f32[1,128], index: 2, kind: input, shape index: {}]   ;;  %s1781_s3 = inlined_call_operand.hbm [shape: bf16[128,128], index: 3, kind: input, shape index: {}]   ;;  %s1782_s4 = inlined_call_operand.vmem [shape: f32[1,128], index: 4, kind: input, shape index: {}]   ;;  %s1783_s5 = inlined_call_operand.hbm [shape: f32[256,128], index: 5, kind: output, shape index: {}]  }
   0x1   :  { %12 = vsyncpa [#allocation3 + $0x1], 0 }
   0x2   :  { %13 = vsyncpa [#allocation6], 0 }
   0x3   :  { %14 = vsyncpa [#allocation4], 0 }
   0x4   :  { %16 = vsyncpa [#allocation4 + $0x1], 0  ;;  %s1552_s18 = smov 0   ;;  %s1554_s19 = smov 0  }
   0x5   :  { %s1556_s20 = smov 0   ;;  %s1558_s21 = smov 0  }
   0x6 LB: > { %s1573_s22 = sadd.s32 4294967295, %s1510_s21   ;;  %s1006_s23 = sadd.s32 4294967294, %s1510_s21   ;;  %s1510_s21 = sphi %s1558_s21, %s1804_s21   ;;  %s1506_s20 = sphi %s1556_s20, %s1803_s20   ;;  %s1502_s19 = sphi %s1554_s19, %s1802_s19   ;;  %s1498_s18 = sphi %s1552_s18, %s1801_s18  }
   0x7   : > { %p42_p0 = scmp.ne.s32.totalorder %s1502_s19, %s1498_s18  ;;  %p1784_p1 = scmp.eq.s32.totalorder %s1573_s22, 0 }
   0x8   : > { %p156_p3 = scmp.eq.s32.totalorder %s1006_s23, 3  ;;  %p1007_p5 = scmp.ge.s32.totalorder %s1510_s21, 1 }
   0x9   : > { %p1582_p4 = por %p1784_p1, %p42_p0  ;;  %p163_p7 = scmp.lt.s32.totalorder %s1510_s21, 5 }
   0xa   : > { %p1587_p6 = por %p156_p3, %p42_p0  ;;  %s1512_s27 = smov [#allocation5]  }
   0xb   : > { %s1788_s24 = scalar_select %p1582_p4, 1, 0 }
   0xc   : > { %s1789_s25 = scalar_select %p1587_p6, 1, 0 }
   0xd   : > { %p1592_p8 = pnand %p1007_p5, %p163_p7  ;;  %s175_s28 = sshll.u32 %s1512_s27, 4  ;;  %s176_s28 = int_to_ptr.vmem [resolvable:$true] %s175_s28 }
   0xe   : > { %s1513_s30 = smov [#allocation7]   ;;  %s1373_s7 = scalar_lea.vmem %s176_s28, 3072 }
   0xf   : > { %s1790_s26 = scalar_select %p1592_p8, 1, 0 }
  0x10   : > { %p1221_p9 = pneg %p1592_p8  ;;  %s191_s6 = sshll.u32 %s1513_s30, 4  ;;  %s192_s6 = int_to_ptr.vmem [resolvable:$true] %s191_s6 }
  0x11   : > { %p1374_p12 = scmp.ne.s32.totalorder %s176_s28, %s1373_s7  ;;  %p1381_p3 = scmp.lt.s32.totalorder %s176_s28, %s176_s28 }
  0x12   : > { %p1600_p10 = pnand %p1221_p9, %p1784_p1  ;;  %p1382_p5 = scmp.lt.s32.totalorder %s1373_s7, %s1373_s7 }
  0x14   : > { %p1364_p11 = pneg %p1600_p10  ;;  %p1383_p7 = por %p1382_p5, %p1381_p3 }
  0x16   : > { %p1376_p13 = pnand %p1374_p12, %p1364_p11 }
  0x18   : > { %p1377_p0 = pneg %p1376_p13 }
  0x1a   : > { %p1384_p9 = pnand %p1383_p7, %p1377_p0 }
  0x1c   : > { %1387 = shalt.err (!%p1384_p9)
}
  0x1d   : > { %s1514_s8 = smov 64   ;;  %s1515_s9 = smov 4  }
  0x1e   : > { %1224 = dma.hbm_to_vmem [thread:$0]  (!%p1600_p10), %s1779_s1, 3072, %s176_s28, [#allocation6], %s1514_s8, %s1514_s8, %s1515_s9  }
  0x1f   : > { %s1399_s12 = scalar_lea.vmem %s192_s6, 1024  ;;  %p1407_p2 = scmp.lt.s32.totalorder %s192_s6, %s192_s6 }
  0x20   : > { %p1400_p1 = scmp.ne.s32.totalorder %s192_s6, %s1399_s12  ;;  %p1408_p6 = scmp.lt.s32.totalorder %s1399_s12, %s1399_s12 }
  0x22   : > { %p1402_p12 = pnand %p1400_p1, %p1364_p11  ;;  %p1409_p3 = por %p1408_p6, %p1407_p2 }
  0x24   : > { %p1403_p13 = pneg %p1402_p12 }
  0x26   : > { %p1410_p0 = pnand %p1409_p3, %p1403_p13 }
  0x28   : > { %1413 = shalt.err (!%p1410_p0)
}
  0x29   : > { %1227 = dma.hbm_to_vmem [thread:$0]  (!%p1600_p10), %s1781_s3, 1024, %s192_s6, [#allocation6], %s1514_s8, %s1514_s8, %s1515_s9  }
  0x2a   : > { %s1623_s15 = sadd.s32 1, %s1510_s21   ;;  %s29_s16 = sadd.s32 1, %s1506_s20 }
  0x2b   : > { %s26_s17 = ssub.s32 %s1510_s21, %s1623_s15  ;;  %p36_p1 = scmp.ne.s32.totalorder %s1506_s20, %s1502_s19 }
  0x2c   : > { %p27_p2 = scmp.eq.s32.totalorder %s26_s17, 0  ;;  %p37_p6 = scmp.eq.s32.totalorder %s1510_s21, 0 }
  0x2d   : > { %p1792_p11 = scmp.eq.s32.totalorder %s1573_s22, 3  ;;  %p1238_p7 = scmp.lt.s32.totalorder %s1510_s21, 4 }
  0x2e   : > { %s1639_s27 = scalar_select %p27_p2, %s1506_s20, %s29_s16  }
  0x2f   : > { %p1633_p5 = por %p1792_p11, %p36_p1  ;;  %p38_p9 = por %p37_p6, %p36_p1 }
  0x30   : > { %s208_s28 = sand.u32 1, %s1506_s20   ;;  %s1207_s30 = smul.u32 1536, %s1510_s21 }
  0x31   : > { %s1793_s23 = scalar_select %p1633_p5, 1, 0 }
  0x32   : > { %s1206_s29 = smul.u32 96, %s208_s28  ;;  %p1643_p10 = pnand %p1238_p7, %p38_p9 }
  0x33   : > { %s1650_s9 = scalar_lea.hbm %s1778_s0, %s1207_s30  ;;  %s1654_s12 = scalar_lea.sflag [#allocation3], %s208_s28 }
  0x34   : > { %s212_s10 = scalar_lea.vmem [#allocation2], %s1206_s29  ;;  %s1414_s13 = scalar_lea.hbm %s1650_s9, 1536 }
  0x35   : > { %s220_s11 = sshll.u32 %s212_s10, 4  ;;  %p1415_p12 = scmp.ne.s32.totalorder %s1650_s9, %s1414_s13  ;;  %s1652_s11 = int_to_ptr.vmem [resolvable:$true] %s220_s11 }
  0x36   : > { %p1416_p13 = pneg %p1643_p10  ;;  %s1419_s17 = scalar_lea.hbm %s1778_s0, 6144 }
  0x37   : > { %p1420_p1 = scmp.lt.s32.totalorder %s1650_s9, %s1778_s0  ;;  %p1421_p2 = scmp.lt.s32.totalorder %s1419_s17, %s1414_s13 }
  0x38   : > { %p1417_p3 = pnand %p1416_p13, %p1415_p12 }
  0x39   : > { %p1422_p6 = por %p1421_p2, %p1420_p1 }
  0x3a   : > { %p1418_p0 = pneg %p1417_p3 }
  0x3c   : > { %p1423_p11 = pnand %p1422_p6, %p1418_p0 }
  0x3e   : > { %1426 = shalt.err (!%p1423_p11)
}
  0x3f   : > { %s1427_s28 = scalar_lea.vmem %s1652_s11, 1536  ;;  %s1516_s29 = smov [#allocation2]  }
  0x40   : > { %p1428_p7 = scmp.ne.s32.totalorder %s1652_s11, %s1427_s28  ;;  %s1432_s8 = sshll.u32 %s1516_s29, 4  ;;  %s1433_s8 = int_to_ptr.vmem [resolvable:$false] %s1432_s8 }
  0x41   : > { %s1434_s10 = scalar_lea.vmem %s1433_s8, 3072  ;;  %p1435_p3 = scmp.lt.s32.totalorder %s1652_s11, %s1433_s8 }
  0x42   : > { %p1430_p9 = pnand %p1428_p7, %p1416_p13  ;;  %p1436_p5 = scmp.lt.s32.totalorder %s1434_s10, %s1427_s28 }
  0x44   : > { %p1431_p12 = pneg %p1430_p9  ;;  %p1437_p4 = por %p1436_p5, %p1435_p3 }
  0x46   : > { %p1438_p8 = pnand %p1437_p4, %p1431_p12 }
  0x48   : > { %1441 = shalt.err (!%p1438_p8)
}
  0x49   : > { %s1517_s13 = smov 192   ;;  %s1518_s14 = smov 12  }
  0x4a   : > { %1231 = dma.hbm_to_vmem [thread:$0]  (!%p1643_p10), %s1650_s9, 1536, %s1652_s11, %s1654_s12, %s1517_s13, %s1517_s13, %s1518_s14  }
  0x4b   : > { %p1795_p13 = scmp.ne.s32.totalorder %s1790_s26, 0 }
  0x4c   : > { %s1678_s16 = sand.u32 (!%p1795_p13), 1, %s1502_s19   ;;  %p1796_p4 = scmp.ne.s32.totalorder (!%p1795_p13), %s1788_s24, 0 }
  0x4d   : > { %232 = sbr.rel (%p1795_p13) target bundleno = 601 (0x259), region = 40  ;;  %s235_s30 = scalar_lea.sflag (!%p1795_p13), [#allocation3], %s1678_s16 }
  0x4e   : > { %s1208_s17 = smul.u32 (!%p1795_p13), 96, %s1678_s16 }
  0x50   : > { %s1682_s7 = scalar_lea.vmem (!%p1795_p13), [#allocation2], %s1208_s17 }
  0x52   : > { %1485 = dma.done.wait (%p1796_p4), %s235_s30, 1536  }
  0x53   : > { %1487 = vsyncadd (%p1796_p4), %s235_s30, 4294965760  ;;  %p1797_p8 = scmp.eq.s32.totalorder %s1573_s22, 0 }
  0x55   : > { %1489 = dma.done.wait (%p1797_p8), [#allocation6], 4096   ;;  %p1798_p5 = pmov %p1797_p8 }
  0x56   : > { %v1282_v0 = vld [vmem:[#allocation5 + $0x78] sm:$0xff]   ;;  %v1284_v2 = vld [vmem:[#allocation5 + $0x70] sm:$0xff]   ;;  %v1287_v5 = vld [vmem:[#allocation5 + $0x68] sm:$0xff]   ;;  %s1017_s11 = sshll.u32 %s1678_s16, 6  ;;  %s1077_s29 = sshll.u32 %s1573_s22, 10 }
  0x57   : > { %1491 = vsyncadd (%p1798_p5), [#allocation6], 4294963200  ;;  %v1283_v1 = vld [vmem:[#allocation5 + $0x38] sm:$0xff]   ;;  %1078 = vmatprep.subr.bf16.mxu0 %v1282_v0  ;;  %v1286_v4 = vld [vmem:[#allocation5 + $0x30] sm:$0xff]   ;;  %s1712_s12 = scalar_lea.vmem [#allocation8], %s1017_s11  ;;  %s1733_s13 = scalar_lea.hbm %s1783_s5, %s1077_s29 }
  0x58   : > { %1079 = vmatpush3.bf16.msra.mxu0 %v1283_v1  ;;  %v1285_v3 = vld [vmem:[#allocation5 + $0xb8] sm:$0xff]   ;;  %v1288_v6 = vld [vmem:[#allocation5 + $0xb0] sm:$0xff]   ;;  %v1289_v7 = vld [vmem:[#allocation5 + $0x28] sm:$0xff]   ;;  %s914_s28 = sshll.u32 %s1712_s12, 4  ;;  %s901_s22 = scalar_lea.sflag [#allocation4], %s1678_s16  ;;  %s1726_s28 = int_to_ptr.vmem [resolvable:$true] %s914_s28 }
  0x59   : > { %1080 = vmatprep.subr.bf16.mxu0 %v1284_v2  ;;  %1142 = vmatprep.subr.bf16.mxu1 %v1285_v3  ;;  %v1290_v8 = vld [vmem:[#allocation5 + $0x60] sm:$0xff]   ;;  %v1291_v9 = vld [vmem:[#allocation5 + $0xa8] sm:$0xff]   ;;  %v1293_v11 = vld [vmem:[#allocation5 + $0x58] sm:$0xff]   ;;  %s1442_s14 = scalar_lea.vmem %s1726_s28, 1024  ;;  %p1799_p0 = scmp.ne.s32.totalorder %s1793_s23, 0 }
  0x5a   : > { %1143 = vmatpush3.bf16.msra.mxu1 %v1285_v3  ;;  %v1292_v10 = vld [vmem:[#allocation5 + $0x20] sm:$0xff]   ;;  %v1295_v13 = vld [vmem:[#allocation5 + $0x18] sm:$0xff]   ;;  %v1296_v15 = vld [vmem:[#allocation5 + $0x50] sm:$0xff]   ;;  %p1443_p10 = scmp.ne.s32.totalorder %s1726_s28, %s1442_s14  ;;  %s1519_s17 = smov [#allocation8]  }
  0x5b   : > { %1144 = vmatprep.subr.bf16.mxu1 %v1288_v6  ;;  %v1294_v12 = vld [vmem:[#allocation5 + $0xa0] sm:$0xff]   ;;  %v1297_v14 = vld [vmem:[#allocation5 + $0x98] sm:$0xff]   ;;  %v1298_v16 = vld [vmem:[#allocation5 + $0x10] sm:$0xff]   ;;  %s1446_s30 = sshll.u32 %s1519_s17, 4  ;;  %s1447_s30 = int_to_ptr.vmem [resolvable:$false] %s1446_s30 }
  0x5c   : > { %1081 = vmatpush3.bf16.msra.mxu0 %v1286_v4  ;;  %v1300_v17 = vld [vmem:[#allocation5 + $0x90] sm:$0xff]   ;;  %v1299_v18 = vld [vmem:[#allocation5 + $0x48] sm:$0xff]   ;;  %v1302_v20 = vld [vmem:[#allocation5 + $0x40] sm:$0xff]   ;;  %p1444_p1 = pnand %p1443_p10, %p1799_p0  ;;  %p1449_p6 = scmp.lt.s32.totalorder %s1726_s28, %s1447_s30 }
  0x5d   : > { %1082 = vmatprep.subr.bf16.mxu0 %v1287_v5  ;;  %v1301_v19 = vld [vmem:[#allocation5 + $0x8] sm:$0xff]   ;;  %v1307_v22 = vld [vmem:[%s1682_s7 + $0x4] ss:$12 sps:$4 sm:$0xff]   ;;  %v1322_v30 = vld [vmem:[#allocation7 + $0x38] sm:$0xff]  }
  0x5e   : > { %1145 = vmatpush3.bf16.msra.mxu1 %v1288_v6  ;;  %v1303_v21 = vld [vmem:[#allocation5 + $0x88] sm:$0xff]   ;;  %v1304_v23 = vld [vmem:[#allocation5] sm:$0xff]   ;;  %587 = vmatprep.mubr.bf16.mxu0 %v1307_v22  ;;  %v1323_v31 = vld [vmem:[#allocation7 + $0x30] sm:$0xff]   ;;  %p1445_p2 = pneg %p1444_p1 }
  0x5f   : > { %1146 = vmatprep.subr.bf16.mxu1 %v1291_v9  ;;  %v1309_v24 = vld [vmem:[%s1682_s7 + $0x8] ss:$12 sps:$4 sm:$0xff]   ;;  %v1308_v25 = vld [vmem:[#allocation5 + $0x80] sm:$0xff]   ;;  %v1318_v34 = vld [vmem:[%s1682_s7 + $0x50] ss:$12 sps:$4 sm:$0xff]  }
  0x60   : > { %1083 = vmatpush3.bf16.msra.mxu0 %v1289_v7  ;;  %1158 = vmatprep.mubr.bf16.mxu1 %v1309_v24  ;;  %v1305_v26 = vld [vmem:[%s1682_s7] ss:$12 sps:$4 sm:$0xff]   ;;  %v1311_v27 = vld [vmem:[%s1682_s7 + $0x1c] ss:$12 sps:$4 sm:$0xff]   ;;  %v1317_v29 = vld [vmem:[%s1682_s7 + $0x38] ss:$12 sps:$4 sm:$0xff]  }
  0x61   : > { %1084 = vmatprep.subr.bf16.mxu0 %v1290_v8  ;;  %v1310_v28 = vld [vmem:[%s1682_s7 + $0x20] ss:$12 sps:$4 sm:$0xff]   ;;  %v1313_v32 = vld [vmem:[%s1682_s7 + $0x18] ss:$12 sps:$4 sm:$0xff]   ;;  %v1316_v35 = vld [vmem:[%s1682_s7 + $0x30] ss:$12 sps:$4 sm:$0xff]  }
  0x62   : > { %1147 = vmatpush3.bf16.msra.mxu1 %v1291_v9  ;;  %v1314_v33 = vld [vmem:[%s1682_s7 + $0x34] ss:$12 sps:$4 sm:$0xff]   ;;  %v1319_v36 = vld [vmem:[%s1682_s7 + $0x4c] ss:$12 sps:$4 sm:$0xff]  }
  0x63   : > { %1148 = vmatprep.subr.bf16.mxu1 %v1294_v12  ;;  %v1321_v37 = vld [vmem:[%s1682_s7 + $0x48] ss:$12 sps:$4 sm:$0xff]   ;;  %v1325_v39 = vld [vmem:[#allocation7 + $0x20] sm:$0xff]   ;;  %v1326_v40 = vld [vmem:[#allocation7 + $0x18] sm:$0xff]   ;;  %s1448_s7 = scalar_lea.vmem %s1447_s30, 2048 }
  0x64   : > { %1085 = vmatpush3.bf16.msra.mxu0 %v1292_v10  ;;  %v1324_v38 = vld [vmem:[#allocation7 + $0x28] sm:$0xff]   ;;  %v1327_v41 = vld [vmem:[#allocation7 + $0x10] sm:$0xff]   ;;  %v1329_v43 = vld [vmem:[#allocation7] sm:$0xff]   ;;  %p1450_p11 = scmp.lt.s32.totalorder %s1448_s7, %s1442_s14 }
  0x65   : > { %1086 = vmatprep.subr.bf16.mxu0 %v1293_v11  ;;  %v1328_v42 = vld [vmem:[#allocation7 + $0x8] sm:$0xff]   ;;  %v1018_v46 = vld [vmem:[%s1780_s2] ss:$0 sm:$0xff] }
  0x66   : > { %1149 = vmatpush3.bf16.msra.mxu1 %v1294_v12  ;;  %p1451_p7 = por %p1450_p11, %p1449_p6 }
  0x67   : > { %1150 = vmatprep.subr.bf16.mxu1 %v1297_v14 }
  0x68   : > { %1087 = vmatpush3.bf16.msra.mxu0 %v1295_v13  ;;  %p1452_p9 = pnand %p1451_p7, %p1445_p2 }
  0x69   : > { %1088 = vmatprep.subr.bf16.mxu0 %v1296_v15 }
  0x6a   : > { %1151 = vmatpush3.bf16.msra.mxu1 %v1297_v14 }
  0x6b   : > { %1152 = vmatprep.subr.bf16.mxu1 %v1300_v17 }
  0x6c   : > { %1089 = vmatpush3.bf16.msra.mxu0 %v1298_v16 }
  0x6d   : > { %1090 = vmatprep.subr.bf16.mxu0 %v1299_v18 }
  0x6e   : > { %1153 = vmatpush3.bf16.msra.mxu1 %v1300_v17 }
  0x6f   : > { %1154 = vmatprep.subr.bf16.mxu1 %v1303_v21 }
  0x70   : > { %1091 = vmatpush3.bf16.msra.mxu0 %v1301_v19 }
  0x71   : > { %1092 = vmatprep.subr.bf16.mxu0 %v1302_v20 }
  0x72   : > { %1155 = vmatpush3.bf16.msra.mxu1 %v1303_v21 }
  0x73   : > { %1156 = vmatprep.subr.bf16.mxu1 %v1308_v25 }
  0x74   : > { %1093 = vmatpush3.bf16.msra.mxu0 %v1304_v23 }
  0x75   : > { %1166 = vmatprep.subr.bf16.mxu0 %v1322_v30 }
  0x76   : > { %1157 = vmatpush3.bf16.msra.mxu1 %v1308_v25 }
  0x77   : > { %588 = vmatmul.mubr.bf16.vlgmr.msra.gmra.mxu0 %v1305_v26  ;;  %1190 = vmatprep.subr.bf16.mxu1 %v1322_v30 }
  0x78   : > { %595 = vmatprep.mubr.bf16.mxu0 %v1311_v27  ;;  %1167 = vmatpush3.bf16.msra.mxu0 %v1322_v30 }
  0x79   : > { %1159 = vmatmul.mubr.bf16.vlgmr.msra.gmra.mxu1 %v1310_v28  ;;  %1168 = vmatprep.subr.bf16.mxu0 %v1323_v31 }
  0x7a   : > { %1162 = vmatprep.mubr.bf16.mxu1 %v1317_v29  ;;  %1198 = vmatpush3.bf16.msra.mxu1 %v1322_v30 }
  0x7b   : > { %1191 = vmatprep.subr.bf16.mxu1 %v1323_v31 }
  0x7c   : > { %1169 = vmatpush3.bf16.msra.mxu0 %v1323_v31 }
  0x7d   : > { %1170 = vmatprep.subr.bf16.mxu0 %v1324_v38 }
  0x7e   : > { %1199 = vmatpush3.bf16.msra.mxu1 %v1323_v31 }
  0x7f   : > { %596 = vmatmul.mubr.bf16.gmra.mxu0 %v1313_v32  ;;  %1192 = vmatprep.subr.bf16.mxu1 %v1324_v38 }
  0x80   : > { %603 = vmatprep.mubr.bf16.mxu0 %v1314_v33  ;;  %1171 = vmatpush3.bf16.msra.mxu0 %v1324_v38 }
  0x81   : > { %1163 = vmatmul.mubr.bf16.gmra.mxu1 %v1318_v34  ;;  %1172 = vmatprep.subr.bf16.mxu0 %v1325_v39 }
  0x82   : > { %1200 = vmatpush3.bf16.msra.mxu1 %v1324_v38 }
  0x83   : > { %1193 = vmatprep.subr.bf16.mxu1 %v1325_v39 }
  0x84   : > { %1173 = vmatpush3.bf16.msra.mxu0 %v1325_v39 }
  0x85   : > { %1174 = vmatprep.subr.bf16.mxu0 %v1326_v40 }
  0x86   : > { %1201 = vmatpush3.bf16.msra.mxu1 %v1325_v39 }
  0x87   : > { %604 = vmatmul.mubr.bf16.gmra.mxu0 %v1316_v35  ;;  %1194 = vmatprep.subr.bf16.mxu1 %v1326_v40 }
  0x88   : > { %611 = vmatprep.mubr.bf16.mxu0 %v1319_v36  ;;  %1175 = vmatpush3.bf16.msra.mxu0 %v1326_v40 }
  0x89   : > { %1176 = vmatprep.subr.bf16.mxu0 %v1327_v41 }
  0x8a   : > { %1202 = vmatpush3.bf16.msra.mxu1 %v1326_v40 }
  0x8b   : > { %1195 = vmatprep.subr.bf16.mxu1 %v1327_v41 }
  0x8c   : > { %1177 = vmatpush3.bf16.msra.mxu0 %v1327_v41 }
  0x8d   : > { %1178 = vmatprep.subr.bf16.mxu0 %v1328_v42 }
  0x8e   : > { %1203 = vmatpush3.bf16.msra.mxu1 %v1327_v41  ;;  %v1055_v41 = vld [vmem:[%s1782_s4] ss:$0 sm:$0xff] }
  0x8f   : > { %612 = vmatmul.mubr.bf16.gmra.mxu0 %v1321_v37  ;;  %1196 = vmatprep.subr.bf16.mxu1 %v1328_v42 }
  0x90   : > { %1179 = vmatpush3.bf16.msra.mxu0 %v1328_v42 }
  0x91   : > { %1180 = vmatprep.subr.bf16.mxu0 %v1329_v43 }
  0x92   : > { %1204 = vmatpush3.bf16.msra.mxu1 %v1328_v42 }
  0x93   : > { %1197 = vmatprep.subr.bf16.mxu1 %v1329_v43 }
  0x94   : > { %1181 = vmatpush3.bf16.msra.mxu0 %v1329_v43 }
  0x96   : > { %1205 = vmatpush3.bf16.msra.mxu1 %v1329_v43 }
 0x137   : > { %v1094_v44 = vpop.f32.mrf.mxu0 }
 0x139   : > { %v1095_v45 = vpop.f32.mrf.mxu0  ;;  %v1160_v48 = vpop.f32.mrf.mxu1 }
 0x13a   : > { %v1096_v47 = vadd.f32 %v1095_v45, %v1094_v44 }
 0x13b   : > { %v1097_v49 = vpop.f32.mrf.mxu0  ;;  %v654_v51 = vpop.f32.mrf.mxu1 }
 0x13c   : > { %v590_v50 = vadd.f32 %v1096_v47, %v1018_v46 }
 0x13d   : > { %v1098_v52 = vpop.f32.mrf.mxu0  ;;  %v1161_v54 = vpop.f32.mrf.mxu1 }
 0x13e   : > { %v1099_v53 = vadd.f32 %v1098_v52, %v1097_v49  ;;  %v655_v56 = vadd.f32 %v654_v51, %v590_v50 }
 0x13f   : > { %v1100_v55 = vpop.f32.mrf.mxu0  ;;  %v657_v58 = vpop.f32.mrf.mxu1 }
 0x140   : > { %v593_v57 = vadd.f32 %v1099_v53, %v1018_v46  ;;  %v685_v0 = vmax.f32 %v655_v56, 0.0 }
 0x141   : > { %v1101_v59 = vpop.f32.mrf.mxu0  ;;  %v1164_v63 = vpop.f32.mrf.mxu1 }
 0x142   : > { %v1102_v60 = vadd.f32 %v1101_v59, %v1100_v55  ;;  %v658_v61 = vadd.f32 %v657_v58, %v593_v57 }
 0x143   : > { %v1103_v62 = vpop.f32.mrf.mxu0  ;;  %v670_v7 = vpop.f32.mrf.mxu1 }
 0x144   : > { %v598_v1 = vadd.f32 %v1102_v60, %v1018_v46  ;;  %v686_v2 = vmax.f32 %v658_v61, 0.0 }
 0x145   : > { %v1104_v3 = vpop.f32.mrf.mxu0  ;;  %v1165_v14 = vpop.f32.mrf.mxu1 }
 0x146   : > { %v693_v4 = vpack.c.bf16 %v686_v2, %v685_v0  ;;  %v1105_v5 = vadd.f32 %v1104_v3, %v1103_v62  ;;  %v663_v8 = vadd.f32 %v1160_v48, %v598_v1 }
 0x147   : > { %v1106_v6 = vpop.f32.mrf.mxu0  ;;  %v673_v22 = vpop.f32.mrf.mxu1 }
 0x148   : > { %v601_v9 = vadd.f32 %v1105_v5, %v1018_v46  ;;  %1182 = vmatprep.mubr.bf16.mxu0 %v693_v4  ;;  %v687_v15 = vmax.f32 %v663_v8, 0.0  ;;  %v833_v8 = vlaneseq }
 0x149   : > { %v1107_v10 = vpop.f32.mrf.mxu0 }
 0x14a   : > { %v666_v11 = vadd.f32 %v1161_v54, %v601_v9  ;;  %v1108_v12 = vadd.f32 %v1107_v10, %v1106_v6 }
 0x14b   : > { %v1109_v13 = vpop.f32.mrf.mxu0 }
 0x14c   : > { %v688_v16 = vmax.f32 %v666_v11, 0.0  ;;  %v606_v17 = vadd.f32 %v1108_v12, %v1018_v46  ;;  %v834_v11 = vand.u32 127, %v833_v8 }
 0x14d   : > { %v1110_v18 = vpop.f32.mrf.mxu0 }
 0x14e   : > { %v694_v19 = vpack.c.bf16 %v688_v16, %v687_v15  ;;  %v1111_v20 = vadd.f32 %v1110_v18, %v1109_v13  ;;  %v671_v23 = vadd.f32 %v670_v7, %v606_v17  ;;  %vm835_vm0 = vcmp.lt.s32.totalorder %v834_v11, 9 }
 0x14f   : > { %v1112_v21 = vpop.f32.mrf.mxu0 }
 0x150   : > { %1183 = vmatmul.mubr.bf16.vlgmr.msra.gmra.mxu0 %v694_v19  ;;  %v609_v24 = vadd.f32 %v1111_v20, %v1018_v46  ;;  %v689_v29 = vmax.f32 %v671_v23, 0.0 }
 0x151   : > { %v1113_v25 = vpop.f32.mrf.mxu0 }
 0x152   : > { %v1114_v26 = vadd.f32 %v1113_v25, %v1112_v21  ;;  %v674_v27 = vadd.f32 %v673_v22, %v609_v24 }
 0x153   : > { %v1115_v28 = vpop.f32.mrf.mxu0 }
 0x154   : > { %v614_v30 = vadd.f32 %v1114_v26, %v1018_v46  ;;  %v690_v31 = vmax.f32 %v674_v27, 0.0 }
 0x155   : > { %v1116_v32 = vpop.f32.mrf.mxu0 }
 0x156   : > { %v695_v33 = vpack.c.bf16 %v690_v31, %v689_v29  ;;  %v1117_v34 = vadd.f32 %v1116_v32, %v1115_v28  ;;  %v679_v35 = vadd.f32 %v1164_v63, %v614_v30 }
 0x158   : > { %v617_v36 = vadd.f32 %v1117_v34, %v1018_v46  ;;  %1186 = vmatprep.mubr.bf16.mxu1 %v695_v33  ;;  %v691_v38 = vmax.f32 %v679_v35, 0.0 }
 0x15a   : > { %v682_v37 = vadd.f32 %v1165_v14, %v617_v36 }
 0x15c   : > { %v692_v39 = vmax.f32 %v682_v37, 0.0 }
 0x15e   : > { %v696_v40 = vpack.c.bf16 %v692_v39, %v691_v38 }
 0x160   : > { %1187 = vmatmul.mubr.bf16.vlgmr.msra.gmra.mxu1 %v696_v40 }
 0x210   : > { %v1184_v42 = vpop.f32.mrf.mxu0 }
 0x211   : > { %v811_v43 = vadd.f32 %v1184_v42, %v1055_v41 }
 0x212   : > { %v802_v44 = vpop.f32.mrf.mxu0 }
 0x213   : > { %v1066_v45 = vmul.f32 -1.442695, %v811_v43  ;;  %v803_v47 = vadd.f32 %v1055_v41, %v802_v44 }
 0x214   : > { %v1185_v48 = vpop.f32.mrf.mxu0 }
 0x215   : > { %1330 = vpow2.f32 %v1066_v45  ;;  %v1064_v49 = vmul.f32 -1.442695, %v803_v47  ;;  %v814_v50 = vadd.f32 %v1185_v48, %v1055_v41 }
 0x216   : > { %v805_v46 = vpop.f32.mrf.mxu0 }
 0x217   : > { %1332 = vpow2.f32 %v1064_v49  ;;  %v1067_v51 = vmul.f32 -1.442695, %v814_v50  ;;  %v806_v52 = vadd.f32 %v1055_v41, %v805_v46 }
 0x219   : > { %1334 = vpow2.f32 %v1067_v51  ;;  %v1065_v53 = vmul.f32 -1.442695, %v806_v52 }
 0x21b   : > { %1336 = vpow2.f32 %v1065_v53 }
 0x220   : > { %v1188_v54 = vpop.f32.mrf.mxu1 }
 0x221   : > { %v827_v55 = vadd.f32 %v1188_v54, %v1055_v41 }
 0x222   : > { %v1331_v56 = vpop.eup %1330  ;;  %v818_v57 = vpop.f32.mrf.mxu1 }
 0x223   : > { %v862_v58 = vadd.f32 1.0, %v1331_v56  ;;  %v1070_v59 = vmul.f32 -1.442695, %v827_v55  ;;  %v819_v60 = vadd.f32 %v1055_v41, %v818_v57 }
 0x224   : > { %v1333_v61 = vpop.eup %1332  ;;  %v1189_v62 = vpop.f32.mrf.mxu1 }
 0x225   : > { %1338 = vrcp.f32 %v862_v58  ;;  %v860_v63 = vadd.f32 1.0, %v1333_v61  ;;  %v1068_v0 = vmul.f32 -1.442695, %v819_v60  ;;  %v830_v1 = vadd.f32 %v1189_v62, %v1055_v41 }
 0x226   : > { %v1335_v2 = vpop.eup %1334  ;;  %1340 = vpow2.f32 %v1070_v59  ;;  %v821_v3 = vpop.f32.mrf.mxu1 }
 0x227   : > { %1342 = vrcp.f32 %v860_v63  ;;  %v863_v4 = vadd.f32 1.0, %v1335_v2  ;;  %v1071_v5 = vmul.f32 -1.442695, %v830_v1  ;;  %v822_v6 = vadd.f32 %v1055_v41, %v821_v3 }
 0x228   : > { %v1337_v7 = vpop.eup %1336  ;;  %1344 = vpow2.f32 %v1068_v0 }
 0x229   : > { %1346 = vrcp.f32 %v863_v4  ;;  %v861_v9 = vadd.f32 1.0, %v1337_v7  ;;  %v1069_v10 = vmul.f32 -1.442695, %v822_v6 }
 0x22a   : > { %1348 = vpow2.f32 %v1071_v5 }
 0x22b   : > { %1350 = vrcp.f32 %v861_v9 }
 0x22c   : > { %1352 = vpow2.f32 %v1069_v10 }
 0x232   : > { %v1339_v12 = vpop.eup %1338 }
 0x233   : > { %v1341_v13 = vpop.eup %1340  ;;  %v886_v14 = vsel %vm835_vm0, %v1339_v12, %v811_v43 }
 0x234   : > { %v1343_v15 = vpop.eup %1342  ;;  %894 = vst [vmem:[%s1712_s12 + $0x10] sm:$0xff] %v886_v14  ;;  %v866_v16 = vadd.f32 1.0, %v1341_v13 }
 0x235   : > { %v1345_v17 = vpop.eup %1344  ;;  %v884_v18 = vsel %vm835_vm0, %v1343_v15, %v803_v47 }
 0x236   : > { %v1347_v19 = vpop.eup %1346  ;;  %892 = vst [vmem:[%s1712_s12] sm:$0xff] %v884_v18  ;;  %1354 = vrcp.f32 %v866_v16  ;;  %v864_v20 = vadd.f32 1.0, %v1345_v17 }
 0x237   : > { %v1349_v21 = vpop.eup %1348  ;;  %v887_v22 = vsel %vm835_vm0, %v1347_v19, %v814_v50 }
 0x238   : > { %v1351_v23 = vpop.eup %1350  ;;  %895 = vst [vmem:[%s1712_s12 + $0x18] sm:$0xff] %v887_v22  ;;  %1356 = vrcp.f32 %v864_v20  ;;  %v867_v24 = vadd.f32 1.0, %v1349_v21 }
 0x239   : > { %v1353_v25 = vpop.eup %1352  ;;  %v885_v26 = vsel %vm835_vm0, %v1351_v23, %v806_v52 }
 0x23a   : > { %893 = vst [vmem:[%s1712_s12 + $0x8] sm:$0xff] %v885_v26  ;;  %1358 = vrcp.f32 %v867_v24  ;;  %v865_v27 = vadd.f32 1.0, %v1353_v25 }
 0x23c   : > { %1360 = vrcp.f32 %v865_v27 }
 0x243   : > { %v1355_v28 = vpop.eup %1354 }
 0x244   : > { %v890_v29 = vsel %vm835_vm0, %v1355_v28, %v827_v55 }
 0x245   : > { %v1357_v30 = vpop.eup %1356  ;;  %898 = vst [vmem:[%s1712_s12 + $0x30] sm:$0xff] %v890_v29 }
 0x246   : > { %v888_v31 = vsel %vm835_vm0, %v1357_v30, %v819_v60 }
 0x247   : > { %v1359_v32 = vpop.eup %1358  ;;  %896 = vst [vmem:[%s1712_s12 + $0x20] sm:$0xff] %v888_v31 }
 0x248   : > { %v891_v33 = vsel %vm835_vm0, %v1359_v32, %v830_v1 }
 0x249   : > { %v1361_v34 = vpop.eup %1360  ;;  %899 = vst [vmem:[%s1712_s12 + $0x38] sm:$0xff] %v891_v33 }
 0x24a   : > { %v889_v35 = vsel %vm835_vm0, %v1361_v34, %v822_v6 }
 0x24b   : > { %897 = vst [vmem:[%s1712_s12 + $0x28] sm:$0xff] %v889_v35 }
 0x24c   : > { %1455 = shalt.err (!%p1452_p9)
}
 0x24d   : > { %s1456_s24 = scalar_lea.hbm %s1733_s13, 1024  ;;  %s1460_s9 = scalar_lea.hbm %s1783_s5, 4096 }
 0x24e   : > { %p1457_p12 = scmp.ne.s32.totalorder %s1733_s13, %s1456_s24  ;;  %p1461_p4 = scmp.lt.s32.totalorder %s1733_s13, %s1783_s5 }
 0x24f   : > { %p1462_p8 = scmp.lt.s32.totalorder %s1460_s9, %s1456_s24 }
 0x250   : > { %p1458_p3 = pnand %p1457_p12, %p1799_p0 }
 0x251   : > { %p1463_p5 = por %p1462_p8, %p1461_p4 }
 0x252   : > { %p1459_p13 = pneg %p1458_p3 }
 0x254   : > { %p1464_p10 = pnand %p1463_p5, %p1459_p13 }
 0x256   : > { %1467 = shalt.err (!%p1464_p10)
}
 0x257   : > { %s1520_s29 = smov 128   ;;  %s1521_s8 = smov 8  }
 0x258   : > { %1219 = dma.vmem_to_hbm [thread:$0]  (%p1799_p0), %s1726_s28, 1024, %s1733_s13, %s901_s22, %s1520_s29, %s1520_s29, %s1521_s8  }
 0x259 PF: > { %p1241_p1 = scmp.ge.s32.totalorder %s1510_s21, 2  ;;  %s929_s10 = sand.u32 1, %s1498_s18  }
 0x25a   : > { %p1800_p2 = scmp.ne.s32.totalorder %s1789_s25, 0  ;;  %s930_s14 = scalar_lea.sflag [#allocation4], %s929_s10 }
 0x25c   : > { %p1233_p6 = pnand %p1241_p1, %p1800_p2 }
 0x25e   : > { %p1234_p11 = pneg %p1233_p6 }
 0x260   : > { %1493 = dma.done.wait (%p1234_p11), %s930_s14, 1024  }
 0x261   : > { %1495 = vsyncadd (%p1234_p11), %s930_s14, 4294966272  ;;  %p19_p7 = scmp.ge.s32.totalorder %s1623_s15, 6   ;;  %s1801_s18 = smov %s1502_s19 }
 0x262   : > { %s1802_s19 = smov %s1506_s20  ;;  %s1803_s20 = smov %s1639_s27 }
 0x263   : > { %s1804_s21 = smov %s1623_s15  ;;  %21 = sbr.rel (!%p19_p7) target bundleno = 6 (0x6), region = 93 }
 0x268   :  { %935 = vsyncpa [#allocation3], 1 }
 0x269   :  { %937 = vsyncpa [#allocation3 + $0x1], 1 }
 0x26a   :  { %938 = vsyncpa [#allocation6], 1 }
 0x26b   :  { %939 = vsyncpa [#allocation4], 1 }
 0x26c   :  { %941 = vsyncpa [#allocation4 + $0x1], 1 }

</bundles_post_ra>
